<compile_context>
chip_gen: v7x
topology: tpu7x:2x2x1
jax: 0.10.0
libtpu: 0.0.40
codegen_flags: <defaults>
</compile_context>

<pallas_src>
import jax
import jax.numpy as jnp
from jax.experimental import pallas as pl
from jax.experimental.pallas import tpu as pltpu


# ----------------------------------------------------------------------------- kernels

def _fused_kernel(x_ref, w_ref, b_ref, o_ref):
    """One (TM, H) row block of: out = (x @ W + b) + x, fully fused in VMEM."""
    x = x_ref[...]                                                      # (TM, H)
    y = jnp.dot(x, w_ref[...], preferred_element_type=jnp.float32)     # MXU, f32 acc
    y = y + b_ref[...].astype(jnp.float32)                             # (1, H) broadcast
    o_ref[...] = (y + x.astype(jnp.float32)).astype(o_ref.dtype)       # fused residual


def _fused_kernel_ntiled(x_ref, xres_ref, w_ref, b_ref, o_ref):
    """N-tiled variant: out[:, nTN:(n+1)TN] = x @ W[:, nTN:(n+1)TN] + b[n] + x[:, n]."""
    y = jnp.dot(x_ref[...], w_ref[...], preferred_element_type=jnp.float32)
    y = y + b_ref[...].astype(jnp.float32)
    o_ref[...] = (y + xres_ref[...].astype(jnp.float32)).astype(o_ref.dtype)


# ----------------------------------------------------------------------------- wrapper

def _vmem_capacity_bytes():
    """Per-TensorCore VMEM capacity; conservative 64 MiB fallback (v7x-safe)."""
    try:
        info = pltpu.get_tpu_info()
        cap = getattr(info, "vmem_capacity_bytes", None)
        if cap:
            return int(cap)
    except Exception:
        pass
    return 64 * 1024 * 1024


def residual_add(x, w, b, *, target_tm=512):
    """x: (B, S, H), w: (H, H), b: (H,). Returns fn(x) + x with fn = Linear(w, b)."""
    B, S, H = x.shape
    M = B * S
    dtype = x.dtype
    itemsize = jnp.dtype(dtype).itemsize

    x2d = x.reshape(M, H)          # free view, no HBM copy
    b2d = b.reshape(1, H)

    cap = _vmem_capacity_bytes()
    tile_budget = int(0.65 * cap)  # ~41 MiB on v7x (64 MiB/TC), ~83 MiB on v5e/v6e
    vmem_limit = int(0.75 * cap)   # headroom left for compiler internal scratch

    def pick_tm(need_fn):
        # MXU-friendly tile sizes; full-dim M block when the whole thing fits.
        if M <= target_tm and need_fn(M) <= tile_budget:
            return M
        for cand in (1024, 512, 256, 128):
            if cand <= M and need_fn(cand) <= tile_budget:
                return cand
        tm = 128 if M >= 128 else M
        while tm > 8 and need_fn(tm) > tile_budget:
            tm = max(8, (tm // 2) // 8 * 8)
        return tm

    # --- Path A accounting: x/out double-buffered, W/b single-buffered, f32 temps.
    def need_resident(tm, w_bufs=1):
        return (4 * tm * H * itemsize            # x + out tiles, 2 buffers each
                + w_bufs * H * H * itemsize      # resident W
                + 2 * H * itemsize               # bias
                + 2 * tm * H * 4)                # f32 matmul result + residual upcast

    resident_ok = need_resident(min(256, M)) <= tile_budget

    if resident_ok or (H % 128 != 0):
        # ------------------------------------------------ Path A: W resident in VMEM.
        # TODO(synk): if H is not a multiple of 128 AND W does not fit resident, a
        # ragged-lane K/N-tiled fallback would be needed; not exercised by these shapes.
        TM = pick_tm(need_resident)
        grid = (pl.cdiv(M, TM),)
        cost = pl.CostEstimate(
            flops=2 * M * H * H,
            transcendentals=0,
            bytes_accessed=(2 * M * H + H * H + H) * itemsize,
        )

        def run(single_buffer_const):
            const_kw = dict(pipeline_mode=pl.Buffered(1)) if single_buffer_const else {}
            return pl.pallas_call(
                _fused_kernel,
                out_shape=jax.ShapeDtypeStruct((M, H), dtype),
                grid_spec=pltpu.PrefetchScalarGridSpec(
                    num_scalar_prefetch=0,
                    grid=grid,
                    in_specs=[
                        pl.BlockSpec((TM, H), lambda i: (i, 0)),             # x rows (streamed)
                        pl.BlockSpec((H, H), lambda i: (0, 0), **const_kw),  # W (resident)
                        pl.BlockSpec((1, H), lambda i: (0, 0), **const_kw),  # b (resident)
                    ],
                    out_specs=pl.BlockSpec((TM, H), lambda i: (i, 0)),
                ),
                compiler_params=pltpu.CompilerParams(
                    dimension_semantics=("parallel",),
                    vmem_limit_bytes=vmem_limit,
                ),
                cost_estimate=cost,
            )(x2d, w, b2d)

    else:
        # ------------------------------------------------ Path B: N-tiled W (large H).
        TN = 512 if H % 512 == 0 else (256 if H % 256 == 0 else 128)

        def need_ntiled(tm):
            return ((2 * tm * H           # x full row block (resident across j), 2 bufs
                     + 4 * tm * TN        # residual slice + out tile, 2 bufs each
                     + 2 * H * TN         # streamed W column block, 2 bufs
                     + 2 * TN) * itemsize
                    + 2 * tm * TN * 4)    # f32 temps

        TM = pick_tm(need_ntiled)
        grid = (pl.cdiv(M, TM), H // TN)
        cost = pl.CostEstimate(
            flops=2 * M * H * H,
            transcendentals=0,
            bytes_accessed=(3 * M * H + pl.cdiv(M, TM) * H * H + H) * itemsize,
        )

        def run(single_buffer_const):
            del single_buffer_const  # W streams over j; default double-buffering is right.
            return pl.pallas_call(
                _fused_kernel_ntiled,
                out_shape=jax.ShapeDtypeStruct((M, H), dtype),
                grid_spec=pltpu.PrefetchScalarGridSpec(
                    num_scalar_prefetch=0,
                    grid=grid,
                    in_specs=[
                        # full row block for the matmul; index constant over j -> fetched once per i
                        pl.BlockSpec((TM, H), lambda i, j: (i, 0)),
                        # residual columns matching this output tile
                        pl.BlockSpec((TM, TN), lambda i, j: (i, j)),
                        pl.BlockSpec((H, TN), lambda i, j: (0, j)),   # streamed W column block
                        pl.BlockSpec((1, TN), lambda i, j: (0, j)),   # bias slice
                    ],
                    out_specs=pl.BlockSpec((TM, TN), lambda i, j: (i, j)),
                ),
                compiler_params=pltpu.CompilerParams(
                    dimension_semantics=("parallel", "arbitrary"),
                    vmem_limit_bytes=vmem_limit,
                ),
                cost_estimate=cost,
            )(x2d, x2d, w, b2d)

    try:
        out2d = run(True)
    except Exception:
        # Fallback if this jax build rejects pl.Buffered(1); default double-buffering.
        out2d = run(False)

    return out2d.reshape(B, S, H)


# ----------------------------------------------------------------------------- demo

if __name__ == "__main__":
    # Small Transformer-ish shapes: batch=2, seq=8, hidden=32
    B, S, H = 2, 8, 32
    key = jax.random.PRNGKey(0)
    kx, kw, kb = jax.random.split(key, 3)

    x = jax.random.normal(kx, (B, S, H), dtype=jnp.float32)
    # Deterministic parameter init for the wrapped fn (Linear(H, H))
    w = jax.random.normal(kw, (H, H), dtype=jnp.float32) * (1.0 / jnp.sqrt(H))
    b = jax.random.normal(kb, (H,), dtype=jnp.float32) * 0.01

    out = residual_add(x, w, b)
    jax.block_until_ready(out)

    # Reference check (plain JAX): fn(x) + x
    ref = (x @ w + b) + x
    assert jnp.allclose(out, ref, atol=1e-5, rtol=1e-5), "mismatch vs reference"

    print("KERNEL_OK")
</pallas_src>

<mosaic_0001>
module attributes {stable_mosaic.version = 11 : i64} {
  func.func @_fused_kernel(%arg0: i32, %arg1: memref<16x32xf32, #tpu.memory_space<vmem>>, %arg2: memref<32x32xf32, #tpu.memory_space<vmem>>, %arg3: memref<1x32xf32, #tpu.memory_space<vmem>>, %arg4: memref<16x32xf32, #tpu.memory_space<vmem>>) attributes {dimension_semantics = [#tpu.dimension_semantics<parallel>], iteration_bounds = array<i64: 1>, scalar_prefetch = 0 : i64, scratch_operands = 0 : i64, tpu.core_type = #tpu.core_type<tc>, window_params = [{transform_indices = @transform_0, window_bounds = array<i64: 16, 32>}, {pipeline_mode = #tpu.pipeline_mode<synchronous>, transform_indices = @transform_1, window_bounds = array<i64: 32, 32>}, {pipeline_mode = #tpu.pipeline_mode<synchronous>, transform_indices = @transform_2, window_bounds = array<i64: 1, 32>}, {transform_indices = @transform_3, window_bounds = array<i64: 16, 32>}]} {
    %c0 = arith.constant 0 : index
    %c0_0 = arith.constant 0 : index
    %0 = vector.load %arg1[%c0, %c0_0] : memref<16x32xf32, #tpu.memory_space<vmem>>, vector<16x32xf32>
    %c0_1 = arith.constant 0 : index
    %c0_2 = arith.constant 0 : index
    %1 = vector.load %arg2[%c0_1, %c0_2] : memref<32x32xf32, #tpu.memory_space<vmem>>, vector<32x32xf32>
    %cst = arith.constant dense<0.000000e+00> : vector<16x32xf32>
    %2 = tpu.matmul %0, %1, %cst {dimension_numbers = #tpu.dot_dimension_numbers<[1], [0], [0], [1], [0, 0, 1, 1], [], []>} : vector<16x32xf32>, vector<32x32xf32>, vector<16x32xf32> -> vector<16x32xf32>
    %c0_3 = arith.constant 0 : index
    %c0_4 = arith.constant 0 : index
    %3 = vector.load %arg3[%c0_3, %c0_4] : memref<1x32xf32, #tpu.memory_space<vmem>>, vector<1x32xf32>
    %4 = vector.broadcast %3 : vector<1x32xf32> to vector<16x32xf32>
    %5 = arith.addf %2, %4 : vector<16x32xf32>
    %6 = arith.addf %5, %0 : vector<16x32xf32>
    %c0_5 = arith.constant 0 : index
    %c0_6 = arith.constant 0 : index
    %7 = vector.load %arg4[%c0_5, %c0_6] : memref<16x32xf32, #tpu.memory_space<vmem>>, vector<16x32xf32>
    tpu.vector_store %arg4[%c0_5, %c0_6], %6 {strides = array<i32>} : memref<16x32xf32, #tpu.memory_space<vmem>>, vector<16x32xf32>,
    return
  }
  func.func @transform_0(%arg0: i32) -> (i32, i32) {
    %c0_i32 = arith.constant 0 : i32
    %c0_i32_0 = arith.constant 0 : i32
    return %arg0, %c0_i32 : i32, i32
  }
  func.func @transform_1(%arg0: i32) -> (i32, i32) {
    %c0_i32 = arith.constant 0 : i32
    %c0_i32_0 = arith.constant 0 : i32
    %c0_i32_1 = arith.constant 0 : i32
    return %c0_i32, %c0_i32_0 : i32, i32
  }
  func.func @transform_2(%arg0: i32) -> (i32, i32) {
    %c0_i32 = arith.constant 0 : i32
    %c0_i32_0 = arith.constant 0 : i32
    %c0_i32_1 = arith.constant 0 : i32
    return %c0_i32, %c0_i32_0 : i32, i32
  }
  func.func @transform_3(%arg0: i32) -> (i32, i32) {
    %c0_i32 = arith.constant 0 : i32
    %c0_i32_0 = arith.constant 0 : i32
    return %arg0, %c0_i32 : i32, i32
  }
}

module attributes {stable_mosaic.version = 11 : i64} {
  func.func @_fused_kernel(%arg0: i32, %arg1: memref<16x32xf32, #tpu.memory_space<vmem>>, %arg2: memref<32x32xf32, #tpu.memory_space<vmem>>, %arg3: memref<1x32xf32, #tpu.memory_space<vmem>>, %arg4: memref<16x32xf32, #tpu.memory_space<vmem>>) attributes {dimension_semantics = [#tpu.dimension_semantics<parallel>], iteration_bounds = array<i64: 1>, scalar_prefetch = 0 : i64, scratch_operands = 0 : i64, tpu.core_type = #tpu.core_type<tc>, window_params = [{transform_indices = @transform_0, window_bounds = array<i64: 16, 32>}, {pipeline_mode = #tpu.pipeline_mode<synchronous>, transform_indices = @transform_1, window_bounds = array<i64: 32, 32>}, {pipeline_mode = #tpu.pipeline_mode<synchronous>, transform_indices = @transform_2, window_bounds = array<i64: 1, 32>}, {transform_indices = @transform_3, window_bounds = array<i64: 16, 32>}]} {
    %c0 = arith.constant 0 : index
    %c0_0 = arith.constant 0 : index
    %0 = vector.load %arg1[%c0, %c0_0] : memref<16x32xf32, #tpu.memory_space<vmem>>, vector<16x32xf32>
    %c0_1 = arith.constant 0 : index
    %c0_2 = arith.constant 0 : index
    %1 = vector.load %arg2[%c0_1, %c0_2] : memref<32x32xf32, #tpu.memory_space<vmem>>, vector<32x32xf32>
    %cst = arith.constant dense<0.000000e+00> : vector<16x32xf32>
    %2 = tpu.matmul %0, %1, %cst {dimension_numbers = #tpu.dot_dimension_numbers<[1], [0], [0], [1], [0, 0, 1, 1], [], []>} : vector<16x32xf32>, vector<32x32xf32>, vector<16x32xf32> -> vector<16x32xf32>
    %c0_3 = arith.constant 0 : index
    %c0_4 = arith.constant 0 : index
    %3 = vector.load %arg3[%c0_3, %c0_4] : memref<1x32xf32, #tpu.memory_space<vmem>>, vector<1x32xf32>
    %4 = vector.broadcast %3 : vector<1x32xf32> to vector<16x32xf32>
    %5 = arith.addf %2, %4 : vector<16x32xf32>
    %6 = arith.addf %5, %0 : vector<16x32xf32>
    %c0_5 = arith.constant 0 : index
    %c0_6 = arith.constant 0 : index
    %7 = vector.load %arg4[%c0_5, %c0_6] : memref<16x32xf32, #tpu.memory_space<vmem>>, vector<16x32xf32>
    tpu.vector_store %arg4[%c0_5, %c0_6], %6 {strides = array<i32>} : memref<16x32xf32, #tpu.memory_space<vmem>>, vector<16x32xf32>,
    return
  }
  func.func @transform_0(%arg0: i32) -> (i32, i32) {
    %c0_i32 = arith.constant 0 : i32
    %c0_i32_0 = arith.constant 0 : i32
    return %arg0, %c0_i32 : i32, i32
  }
  func.func @transform_1(%arg0: i32) -> (i32, i32) {
    %c0_i32 = arith.constant 0 : i32
    %c0_i32_0 = arith.constant 0 : i32
    %c0_i32_1 = arith.constant 0 : i32
    return %c0_i32, %c0_i32_0 : i32, i32
  }
  func.func @transform_2(%arg0: i32) -> (i32, i32) {
    %c0_i32 = arith.constant 0 : i32
    %c0_i32_0 = arith.constant 0 : i32
    %c0_i32_1 = arith.constant 0 : i32
    return %c0_i32, %c0_i32_0 : i32, i32
  }
  func.func @transform_3(%arg0: i32) -> (i32, i32) {
    %c0_i32 = arith.constant 0 : i32
    %c0_i32_0 = arith.constant 0 : i32
    return %arg0, %c0_i32 : i32, i32
  }
}

</mosaic_0001>

<bundles_post_ra>
// kernel: tpu_custom_call.1
= control target key start
LH: loop header
LB: loop body
LE: loop exit
PB: predicated region body
PF: predicated region fallthrough
CT: control target
= control target key end

     0   :  { %8 = vsyncpa [#allocation3], 0  ;;  %s342_s0 = inlined_call_operand.hbm [shape: f32[16,32], index: 0, kind: input, shape index: {}]   ;;  %s343_s1 = inlined_call_operand.hbm [shape: f32[32,32], index: 1, kind: input, shape index: {}]   ;;  %s344_s2 = inlined_call_operand.vmem [shape: f32[1,32], index: 2, kind: input, shape index: {}]   ;;  %s345_s3 = inlined_call_operand.hbm [shape: f32[16,32], index: 3, kind: output, shape index: {}]  }
   0x1   :  { %9 = vsyncpa [#allocation6], 0 }
   0x2   :  { %10 = vsyncpa [#allocation4], 0  ;;  %s265_s12 = smov [#allocation2]   ;;  %s193_s16 = scalar_lea.hbm %s342_s0, 256 }
   0x3   :  { %s16_s13 = sshll.u32 %s265_s12, 4  ;;  %p194_p0 = scmp.ne.s32.totalorder %s342_s0, %s193_s16  ;;  %s17_s13 = int_to_ptr.vmem [resolvable:$true] %s16_s13 }
   0x4   :  { %p197_p1 = scmp.lt.u32.totalorder %s193_s16, %s342_s0 }
   0x6   :  { %p199_p2 = pnand %p197_p1, %p194_p0 }
   0x8   :  { %202 = shalt.err (!%p199_p2)
}
   0x9   :  { %s203_s21 = scalar_lea.vmem %s17_s13, 256  ;;  %p208_p4 = scmp.lt.s32.totalorder %s17_s13, %s17_s13 }
   0xa   :  { %p204_p3 = scmp.ne.s32.totalorder %s17_s13, %s203_s21  ;;  %p209_p5 = scmp.lt.s32.totalorder %s203_s21, %s203_s21 }
   0xc   :  { %p210_p6 = por %p209_p5, %p208_p4 }
   0xe   :  { %p211_p7 = pnand %p210_p6, %p204_p3 }
  0x10   :  { %214 = shalt.err (!%p211_p7)
}
  0x11   :  { %s266_s22 = smov 128   ;;  %s267_s23 = smov 8  }
  0x12   :  { %22 = dma.hbm_to_vmem [thread:$0]  %s342_s0, 256, %s17_s13, [#allocation3], %s266_s22, %s266_s22, %s267_s23  }
  0x13   :  { %s268_s26 = smov [#allocation5]   ;;  %s215_s30 = scalar_lea.hbm %s343_s1, 512 }
  0x14   :  { %s28_s27 = sshll.u32 %s268_s26, 4  ;;  %p216_p8 = scmp.ne.s32.totalorder %s343_s1, %s215_s30  ;;  %s29_s27 = int_to_ptr.vmem [resolvable:$true] %s28_s27 }
  0x15   :  { %p219_p9 = scmp.lt.u32.totalorder %s215_s30, %s343_s1 }
  0x17   :  { %p221_p10 = pnand %p219_p9, %p216_p8 }
  0x19   :  { %224 = shalt.err (!%p221_p10)
}
  0x1a   :  { %s225_s8 = scalar_lea.vmem %s29_s27, 512  ;;  %p230_p12 = scmp.lt.s32.totalorder %s29_s27, %s29_s27 }
  0x1b   :  { %p226_p11 = scmp.ne.s32.totalorder %s29_s27, %s225_s8  ;;  %p231_p13 = scmp.lt.s32.totalorder %s225_s8, %s225_s8 }
  0x1d   :  { %p232_p0 = por %p231_p13, %p230_p12 }
  0x1f   :  { %p233_p1 = pnand %p232_p0, %p226_p11 }
  0x21   :  { %236 = shalt.err (!%p233_p1)
}
  0x22   :  { %34 = dma.hbm_to_vmem [thread:$0]  %s343_s1, 512, %s29_s27, [#allocation6], %s266_s22, %s266_s22, %s267_s23  }
  0x23   :  { %259 = dma.done.wait [#allocation3], 256  }
  0x24   :  { %260 = vsyncadd [#allocation3], 4294967040 }
  0x25   :  { %261 = dma.done.wait [#allocation6], 512  }
  0x26   :  { %262 = vsyncadd [#allocation6], 4294966784  ;;  %vm56_vm0 = vcmask 261120   ;;  %v45_v0 = vld [vmem:[#allocation5] sm:$0xff]  ;;  %v46_v1 = vld [vmem:[#allocation5 + $0x8] sm:$0xff]  ;;  %s269_s11 = smov [#allocation7]  }
  0x27   :  { %v47_v2 = vld [vmem:[#allocation5 + $0x10] sm:$0xff]  ;;  %v180_v3 = vpack.c.bf16 %v46_v1, %v45_v0  ;;  %v48_v4 = vld [vmem:[#allocation5 + $0x18] sm:$0xff]  ;;  %s147_s12 = sshll.u32 %s269_s11, 4  ;;  %s148_s12 = int_to_ptr.vmem [resolvable:$true] %s147_s12 }
  0x28   :  { %v43_v5 = vld [vmem:[#allocation2] sm:$0xff]  ;;  %v184_v6 = vpack.c.bf16 %v48_v4, %v47_v2  ;;  %v44_v7 = vld [vmem:[#allocation2 + $0x8] sm:$0xff]  ;;  %s237_s13 = scalar_lea.vmem %s148_s12, 256  ;;  %p242_p3 = scmp.lt.s32.totalorder %s148_s12, %s148_s12 }
  0x29   :  { %177 = vmatprep.mubr.msk.f32.mxu0 %vm56_vm0, %v43_v5  ;;  %181 = vmatprep.subr.bf16.mxu0 %v180_v3  ;;  %v160_v8 = vld [vmem:[%s344_s2] ss:$0 sm:$0xff]  ;;  %p238_p2 = scmp.ne.s32.totalorder %s148_s12, %s237_s13  ;;  %p243_p4 = scmp.lt.s32.totalorder %s237_s13, %s237_s13 }
  0x2a   :  { %183 = vmatpush3.bf16.msra.mxu0 %v180_v3 }
  0x2b   :  { %185 = vmatprep.subr.bf16.mxu0 %v184_v6  ;;  %p244_p5 = por %p243_p4, %p242_p3 }
  0x2d   :  { %p245_p6 = pnand %p244_p5, %p238_p2 }
  0x2e   :  { %187 = vmatpush3.bf16.msra.mxu0 %v184_v6 }
  0x31   :  { %178 = vmatmul.mubr.msk.f32.vlgmr.msra.gmra.mrb[0].mxu0 %vm56_vm0, %v44_v7 }
 0x104   :  { %v179_v9 = vpop.f32.mrb[0].mxu0 }
 0x105   :  { %v135_v10 = vadd.f32 %v179_v9, %v160_v8  ;;  %v129_v11 = vpop.f32.mrb[1].mxu0 }
 0x106   :  { %v130_v12 = vadd.f32 %v160_v8, %v129_v11 }
 0x107   :  { %v139_v13 = vadd.f32 %v135_v10, %v44_v7 }
 0x108   :  { %v138_v14 = vadd.f32 %v130_v12, %v43_v5 }
 0x109   :  { %141 = vst.msk [vmem:[#allocation7 + $0x8] sm:$0xff] %vm56_vm0, %v139_v13 }
 0x10a   :  { %140 = vst.msk [vmem:[#allocation7] sm:$0xff] %vm56_vm0, %v138_v14 }
 0x10b   :  { %248 = shalt.err (!%p245_p6)
}
 0x10c   :  { %s249_s15 = scalar_lea.hbm %s345_s3, 256 }
 0x10d   :  { %p250_p7 = scmp.ne.s32.totalorder %s345_s3, %s249_s15  ;;  %p253_p8 = scmp.lt.u32.totalorder %s249_s15, %s345_s3 }
 0x10f   :  { %p255_p9 = pnand %p253_p8, %p250_p7 }
 0x111   :  { %258 = shalt.err (!%p255_p9)
}
 0x112   :  { %153 = dma.vmem_to_hbm [thread:$0]  %s148_s12, 256, %s345_s3, [#allocation4], %s266_s22, %s266_s22, %s267_s23  }
 0x113   :  { %263 = dma.done.wait [#allocation4], 256  }
 0x114   :  { %264 = vsyncadd [#allocation4], 4294967040 }
 0x115   :  { %157 = vsyncpa [#allocation3], 1 }
 0x116   :  { %158 = vsyncpa [#allocation6], 1 }
 0x117   :  { %159 = vsyncpa [#allocation4], 1 }

// kernel: tpu_custom_call.1
= control target key start
LH: loop header
LB: loop body
LE: loop exit
PB: predicated region body
PF: predicated region fallthrough
CT: control target
= control target key end

     0   :  { %8 = vsyncpa [#allocation3], 0  ;;  %s342_s0 = inlined_call_operand.hbm [shape: f32[16,32], index: 0, kind: input, shape index: {}]   ;;  %s343_s1 = inlined_call_operand.hbm [shape: f32[32,32], index: 1, kind: input, shape index: {}]   ;;  %s344_s2 = inlined_call_operand.vmem [shape: f32[1,32], index: 2, kind: input, shape index: {}]   ;;  %s345_s3 = inlined_call_operand.hbm [shape: f32[16,32], index: 3, kind: output, shape index: {}]  }
   0x1   :  { %9 = vsyncpa [#allocation6], 0 }
   0x2   :  { %10 = vsyncpa [#allocation4], 0  ;;  %s265_s12 = smov [#allocation2]   ;;  %s193_s16 = scalar_lea.hbm %s342_s0, 256 }
   0x3   :  { %s16_s13 = sshll.u32 %s265_s12, 4  ;;  %p194_p0 = scmp.ne.s32.totalorder %s342_s0, %s193_s16  ;;  %s17_s13 = int_to_ptr.vmem [resolvable:$true] %s16_s13 }
   0x4   :  { %p197_p1 = scmp.lt.u32.totalorder %s193_s16, %s342_s0 }
   0x6   :  { %p199_p2 = pnand %p197_p1, %p194_p0 }
   0x8   :  { %202 = shalt.err (!%p199_p2)
}
   0x9   :  { %s203_s21 = scalar_lea.vmem %s17_s13, 256  ;;  %p208_p4 = scmp.lt.s32.totalorder %s17_s13, %s17_s13 }
   0xa   :  { %p204_p3 = scmp.ne.s32.totalorder %s17_s13, %s203_s21  ;;  %p209_p5 = scmp.lt.s32.totalorder %s203_s21, %s203_s21 }
   0xc   :  { %p210_p6 = por %p209_p5, %p208_p4 }
   0xe   :  { %p211_p7 = pnand %p210_p6, %p204_p3 }
  0x10   :  { %214 = shalt.err (!%p211_p7)
}
  0x11   :  { %s266_s22 = smov 128   ;;  %s267_s23 = smov 8  }
  0x12   :  { %22 = dma.hbm_to_vmem [thread:$0]  %s342_s0, 256, %s17_s13, [#allocation3], %s266_s22, %s266_s22, %s267_s23  }
  0x13   :  { %s268_s26 = smov [#allocation5]   ;;  %s215_s30 = scalar_lea.hbm %s343_s1, 512 }
  0x14   :  { %s28_s27 = sshll.u32 %s268_s26, 4  ;;  %p216_p8 = scmp.ne.s32.totalorder %s343_s1, %s215_s30  ;;  %s29_s27 = int_to_ptr.vmem [resolvable:$true] %s28_s27 }
  0x15   :  { %p219_p9 = scmp.lt.u32.totalorder %s215_s30, %s343_s1 }
  0x17   :  { %p221_p10 = pnand %p219_p9, %p216_p8 }
  0x19   :  { %224 = shalt.err (!%p221_p10)
}
  0x1a   :  { %s225_s8 = scalar_lea.vmem %s29_s27, 512  ;;  %p230_p12 = scmp.lt.s32.totalorder %s29_s27, %s29_s27 }
  0x1b   :  { %p226_p11 = scmp.ne.s32.totalorder %s29_s27, %s225_s8  ;;  %p231_p13 = scmp.lt.s32.totalorder %s225_s8, %s225_s8 }
  0x1d   :  { %p232_p0 = por %p231_p13, %p230_p12 }
  0x1f   :  { %p233_p1 = pnand %p232_p0, %p226_p11 }
  0x21   :  { %236 = shalt.err (!%p233_p1)
}
  0x22   :  { %34 = dma.hbm_to_vmem [thread:$0]  %s343_s1, 512, %s29_s27, [#allocation6], %s266_s22, %s266_s22, %s267_s23  }
  0x23   :  { %259 = dma.done.wait [#allocation3], 256  }
  0x24   :  { %260 = vsyncadd [#allocation3], 4294967040 }
  0x25   :  { %261 = dma.done.wait [#allocation6], 512  }
  0x26   :  { %262 = vsyncadd [#allocation6], 4294966784  ;;  %vm56_vm0 = vcmask 261120   ;;  %v45_v0 = vld [vmem:[#allocation5] sm:$0xff]  ;;  %v46_v1 = vld [vmem:[#allocation5 + $0x8] sm:$0xff]  ;;  %s269_s11 = smov [#allocation7]  }
  0x27   :  { %v47_v2 = vld [vmem:[#allocation5 + $0x10] sm:$0xff]  ;;  %v180_v3 = vpack.c.bf16 %v46_v1, %v45_v0  ;;  %v48_v4 = vld [vmem:[#allocation5 + $0x18] sm:$0xff]  ;;  %s147_s12 = sshll.u32 %s269_s11, 4  ;;  %s148_s12 = int_to_ptr.vmem [resolvable:$true] %s147_s12 }
  0x28   :  { %v43_v5 = vld [vmem:[#allocation2] sm:$0xff]  ;;  %v184_v6 = vpack.c.bf16 %v48_v4, %v47_v2  ;;  %v44_v7 = vld [vmem:[#allocation2 + $0x8] sm:$0xff]  ;;  %s237_s13 = scalar_lea.vmem %s148_s12, 256  ;;  %p242_p3 = scmp.lt.s32.totalorder %s148_s12, %s148_s12 }
  0x29   :  { %177 = vmatprep.mubr.msk.f32.mxu0 %vm56_vm0, %v43_v5  ;;  %181 = vmatprep.subr.bf16.mxu0 %v180_v3  ;;  %v160_v8 = vld [vmem:[%s344_s2] ss:$0 sm:$0xff]  ;;  %p238_p2 = scmp.ne.s32.totalorder %s148_s12, %s237_s13  ;;  %p243_p4 = scmp.lt.s32.totalorder %s237_s13, %s237_s13 }
  0x2a   :  { %183 = vmatpush3.bf16.msra.mxu0 %v180_v3 }
  0x2b   :  { %185 = vmatprep.subr.bf16.mxu0 %v184_v6  ;;  %p244_p5 = por %p243_p4, %p242_p3 }
  0x2d   :  { %p245_p6 = pnand %p244_p5, %p238_p2 }
  0x2e   :  { %187 = vmatpush3.bf16.msra.mxu0 %v184_v6 }
  0x31   :  { %178 = vmatmul.mubr.msk.f32.vlgmr.msra.gmra.mrb[0].mxu0 %vm56_vm0, %v44_v7 }
 0x104   :  { %v179_v9 = vpop.f32.mrb[0].mxu0 }
 0x105   :  { %v135_v10 = vadd.f32 %v179_v9, %v160_v8  ;;  %v129_v11 = vpop.f32.mrb[1].mxu0 }
 0x106   :  { %v130_v12 = vadd.f32 %v160_v8, %v129_v11 }
 0x107   :  { %v139_v13 = vadd.f32 %v135_v10, %v44_v7 }
 0x108   :  { %v138_v14 = vadd.f32 %v130_v12, %v43_v5 }
 0x109   :  { %141 = vst.msk [vmem:[#allocation7 + $0x8] sm:$0xff] %vm56_vm0, %v139_v13 }
 0x10a   :  { %140 = vst.msk [vmem:[#allocation7] sm:$0xff] %vm56_vm0, %v138_v14 }
 0x10b   :  { %248 = shalt.err (!%p245_p6)
}
 0x10c   :  { %s249_s15 = scalar_lea.hbm %s345_s3, 256 }
 0x10d   :  { %p250_p7 = scmp.ne.s32.totalorder %s345_s3, %s249_s15  ;;  %p253_p8 = scmp.lt.u32.totalorder %s249_s15, %s345_s3 }
 0x10f   :  { %p255_p9 = pnand %p253_p8, %p250_p7 }
 0x111   :  { %258 = shalt.err (!%p255_p9)
}
 0x112   :  { %153 = dma.vmem_to_hbm [thread:$0]  %s148_s12, 256, %s345_s3, [#allocation4], %s266_s22, %s266_s22, %s267_s23  }
 0x113   :  { %263 = dma.done.wait [#allocation4], 256  }
 0x114   :  { %264 = vsyncadd [#allocation4], 4294967040 }
 0x115   :  { %157 = vsyncpa [#allocation3], 1 }
 0x116   :  { %158 = vsyncpa [#allocation6], 1 }
 0x117   :  { %159 = vsyncpa [#allocation4], 1 }

</bundles_post_ra>
